<compile_context>
chip_gen: v5e
topology: v5e:2x2
jax: 0.10.0
libtpu: 0.0.40
codegen_flags: <defaults>
</compile_context>

<pallas_src>
import jax
import jax.numpy as jnp
from jax.experimental import pallas as pl
from jax.experimental.pallas import tpu as pltpu


_LANE = 128
_VPU_K_MAX = 16          # contraction dims <= this run on the VPU, not the MXU
_MAX_TILE_P = 1024       # lane cap: keeps vreg live ranges spill-free on v5e
_TARGET_PX_PER_STEP = 1024  # amortize ~0.35 us fixed per-grid-step overhead


def _dense(w, x):
    """(Co, K) @ (K, TP) -> (Co, TP) in f32.

    For tiny contraction dims the MXU would be almost entirely zero padding
    (and f32 is multi-pass), so do an unrolled broadcast FMA on the VPU
    instead; fall back to the MXU for larger K.
    """
    k = w.shape[1]
    if k <= _VPU_K_MAX:
        acc = w[:, 0:1] * x[0:1, :]
        for c in range(1, k):
            acc = acc + w[:, c:c + 1] * x[c:c + 1, :]
        return acc
    return jnp.dot(w, x, preferred_element_type=jnp.float32)


def _convendmag_kernel(x_ref, w1_ref, b1_ref, w2_ref, b2_ref, w3_ref, b3_ref,
                       o_ref):
    # x_ref: (BN, C_in, tile_p) — pixels on the lane axis, channels on sublanes.
    w1 = w1_ref[...]
    w2 = w2_ref[...]
    w3 = w3_ref[...]
    b1 = b1_ref[...]
    b2 = b2_ref[...]
    b3 = b3_ref[...]
    bn = x_ref.shape[0]
    for b in range(bn):                        # static unroll, bn <= 8
        x = x_ref[b]                           # (C_in, tile_p)
        h = jnp.maximum(_dense(w1, x) + b1, 0.0)   # layer1 + ReLU
        h = jnp.maximum(_dense(w2, h) + b2, 0.0)   # layer2 + ReLU
        o_ref[b] = (_dense(w3, h) + b3).astype(o_ref.dtype)  # layer3 (linear)


def _round_up(x, m):
    return (x + m - 1) // m * m


def _largest_divisor_leq(n, cap):
    for d in range(min(n, cap), 0, -1):
        if n % d == 0:
            return d
    return 1


def conv_endmag_pallas(x_nchw, params):
    """x_nchw: (N, C_in, H, W) float32. Returns (N, C_out, H, W)."""
    w1, b1, w2, b2, w3, b3 = params
    N, C_in, H, W = x_nchw.shape
    C_hid = w1.shape[0]
    C_out = w3.shape[0]
    P = H * W

    # NCHW -> (N, C_in, P): pure reshape, no data movement.
    x = x_nchw.reshape(N, C_in, P).astype(jnp.float32)

    # Pad the pixel axis to a multiple of 128 so every output store is a
    # lane-dense unmasked vst.  Pad pixels are dropped on the way out.
    P_pad = _round_up(P, _LANE)
    if P_pad != P:
        x = jnp.pad(x, ((0, 0), (0, 0), (0, P_pad - P)))

    # ---- pixel-tile selection -------------------------------------------
    # vreg-pressure bound: during layer2 roughly 2*C_hid*tile_p f32 values
    # are live; keep that under ~40 vregs (40 * 8 * 128 elements).
    vreg_budget_elems = 40 * 8 * _LANE
    tp_vreg = max(_LANE,
                  (vreg_budget_elems // max(2 * C_hid, 1)) // _LANE * _LANE)
    tile_p = min(P_pad, _MAX_TILE_P, tp_vreg)
    tile_p = max(_LANE, tile_p // _LANE * _LANE)
    grid_p = pl.cdiv(P_pad, tile_p)

    # ---- batch blocking --------------------------------------------------
    # Fold samples into a grid step when the plane is small, but keep >= 2
    # total steps when the problem allows it (v7x has 2 TensorCores).
    desired_bn = max(1, min(8, _TARGET_PX_PER_STEP // tile_p))
    bn = _largest_divisor_leq(N, desired_bn)
    while bn > 1 and (N // bn) * grid_p < 2:
        bn = _largest_divisor_leq(N, bn - 1)
    # VMEM guard: double-buffered in+out blocks stay far below the scoped
    # default on every generation (v7x: 32 MiB).
    while bn > 1 and bn * (C_in + C_out) * tile_p * 4 * 2 > (6 << 20):
        bn = _largest_divisor_leq(N, bn - 1)
    # Single sample + single pixel block: split the pixel axis so both v7x
    # TensorCores get work.
    if (N // bn) * grid_p < 2 and tile_p > _LANE:
        tile_p = max(_LANE, (tile_p // 2) // _LANE * _LANE)
        grid_p = pl.cdiv(P_pad, tile_p)

    grid = (N // bn, grid_p)

    kernel = pl.pallas_call(
        _convendmag_kernel,
        out_shape=jax.ShapeDtypeStruct((N, C_out, P_pad), jnp.float32),
        grid_spec=pltpu.PrefetchScalarGridSpec(
            num_scalar_prefetch=0,
            grid=grid,
            in_specs=[
                # x tile: (bn, C_in, tile_p) — pixels lane-dense.
                pl.BlockSpec((bn, C_in, tile_p), lambda n, p: (n, 0, p)),
                # Weights / biases: full arrays, constant index_map (resident).
                pl.BlockSpec((C_hid, C_in), lambda n, p: (0, 0)),   # w1
                pl.BlockSpec((C_hid, 1), lambda n, p: (0, 0)),      # b1
                pl.BlockSpec((C_hid, C_hid), lambda n, p: (0, 0)),  # w2
                pl.BlockSpec((C_hid, 1), lambda n, p: (0, 0)),      # b2
                pl.BlockSpec((C_out, C_hid), lambda n, p: (0, 0)),  # w3
                pl.BlockSpec((C_out, 1), lambda n, p: (0, 0)),      # b3
            ],
            out_specs=pl.BlockSpec((bn, C_out, tile_p),
                                   lambda n, p: (n, 0, p)),
        ),
        compiler_params=pltpu.CompilerParams(
            dimension_semantics=("parallel", "parallel")),
    )

    out = kernel(x, w1, b1, w2, b2, w3, b3)
    if P_pad != P:
        out = out[:, :, :P]
    # (N, C_out, P) -> NCHW: pure reshape, no data movement.
    return out.reshape(N, C_out, H, W)


def init_params(key, in_channels, out_channels):
    """Deterministic synthetic params (PyTorch Conv2d(C_in, C_out, 1) layout).

    Weights are stored channel-major as (C_out, C_in) — the squeezed PyTorch
    conv weight — and biases as (C_out, 1) for lane broadcasting.
    """
    hid = 3 * in_channels
    k = jax.random.split(key, 6)
    scale1 = 1.0 / jnp.sqrt(in_channels)
    scale2 = 1.0 / jnp.sqrt(hid)
    w1 = jax.random.uniform(k[0], (hid, in_channels), jnp.float32,
                            -scale1, scale1)
    b1 = jax.random.uniform(k[1], (hid, 1), jnp.float32, -scale1, scale1)
    w2 = jax.random.uniform(k[2], (hid, hid), jnp.float32, -scale2, scale2)
    b2 = jax.random.uniform(k[3], (hid, 1), jnp.float32, -scale2, scale2)
    w3 = jax.random.uniform(k[4], (out_channels, hid), jnp.float32,
                            -scale2, scale2)
    b3 = jax.random.uniform(k[5], (out_channels, 1), jnp.float32,
                            -scale2, scale2)
    return (w1, b1, w2, b2, w3, b3)


def reference_forward(x_nchw, params):
    """Pure-JAX reference mirroring the PyTorch forward (NCHW, 1x1 convs)."""
    w1, b1, w2, b2, w3, b3 = params
    N, C, H, W = x_nchw.shape
    x = x_nchw.reshape(N, C, H * W)
    h = jnp.maximum(jnp.einsum('oc,ncp->nop', w1, x) + b1[None], 0.0)
    h = jnp.maximum(jnp.einsum('oc,ncp->nop', w2, h) + b2[None], 0.0)
    h = jnp.einsum('oc,ncp->nop', w3, h) + b3[None]
    return h.reshape(N, -1, H, W)


if __name__ == "__main__":
    key = jax.random.PRNGKey(0)
    k_x, k_p = jax.random.split(key)

    N, C_in, H, W = 2, 4, 16, 16
    C_out = 8

    x = jax.random.normal(k_x, (N, C_in, H, W), jnp.float32)
    params = init_params(k_p, C_in, C_out)

    out = conv_endmag_pallas(x, params)
    out = jax.block_until_ready(out)

    ref = reference_forward(x, params)
    assert out.shape == (N, C_out, H, W)
    assert jnp.allclose(out, ref, atol=1e-5, rtol=1e-5), "mismatch vs reference"

    print("KERNEL_OK")
</pallas_src>

<mosaic_0001>
module attributes {stable_mosaic.version = 11 : i64} {
  func.func @_convendmag_kernel(%arg0: i32, %arg1: i32, %arg2: memref<1x4x256xf32, #tpu.memory_space<vmem>>, %arg3: memref<12x4xf32, #tpu.memory_space<vmem>>, %arg4: memref<12x1xf32, #tpu.memory_space<vmem>>, %arg5: memref<12x12xf32, #tpu.memory_space<vmem>>, %arg6: memref<12x1xf32, #tpu.memory_space<vmem>>, %arg7: memref<8x12xf32, #tpu.memory_space<vmem>>, %arg8: memref<8x1xf32, #tpu.memory_space<vmem>>, %arg9: memref<1x8x256xf32, #tpu.memory_space<vmem>>) attributes {dimension_semantics = [#tpu.dimension_semantics<parallel>, #tpu.dimension_semantics<parallel>], iteration_bounds = array<i64: 2, 1>, scalar_prefetch = 0 : i64, scratch_operands = 0 : i64, tpu.core_type = #tpu.core_type<tc>, window_params = [{transform_indices = @transform_0, window_bounds = array<i64: 1, 4, 256>}, {pipeline_mode = #tpu.pipeline_mode<synchronous>, transform_indices = @transform_1, window_bounds = array<i64: 12, 4>}, {pipeline_mode = #tpu.pipeline_mode<synchronous>, transform_indices = @transform_2, window_bounds = array<i64: 12, 1>}, {pipeline_mode = #tpu.pipeline_mode<synchronous>, transform_indices = @transform_3, window_bounds = array<i64: 12, 12>}, {pipeline_mode = #tpu.pipeline_mode<synchronous>, transform_indices = @transform_4, window_bounds = array<i64: 12, 1>}, {pipeline_mode = #tpu.pipeline_mode<synchronous>, transform_indices = @transform_5, window_bounds = array<i64: 8, 12>}, {pipeline_mode = #tpu.pipeline_mode<synchronous>, transform_indices = @transform_6, window_bounds = array<i64: 8, 1>}, {transform_indices = @transform_7, window_bounds = array<i64: 1, 8, 256>}]} {
    %c0 = arith.constant 0 : index
    %c0_0 = arith.constant 0 : index
    %0 = vector.load %arg3[%c0, %c0_0] : memref<12x4xf32, #tpu.memory_space<vmem>>, vector<12x4xf32>
    %c0_1 = arith.constant 0 : index
    %c0_2 = arith.constant 0 : index
    %1 = vector.load %arg5[%c0_1, %c0_2] : memref<12x12xf32, #tpu.memory_space<vmem>>, vector<12x12xf32>
    %c0_3 = arith.constant 0 : index
    %c0_4 = arith.constant 0 : index
    %2 = vector.load %arg7[%c0_3, %c0_4] : memref<8x12xf32, #tpu.memory_space<vmem>>, vector<8x12xf32>
    %c0_5 = arith.constant 0 : index
    %c0_6 = arith.constant 0 : index
    %3 = vector.load %arg4[%c0_5, %c0_6] : memref<12x1xf32, #tpu.memory_space<vmem>>, vector<12x1xf32>
    %c0_7 = arith.constant 0 : index
    %c0_8 = arith.constant 0 : index
    %4 = vector.load %arg6[%c0_7, %c0_8] : memref<12x1xf32, #tpu.memory_space<vmem>>, vector<12x1xf32>
    %c0_9 = arith.constant 0 : index
    %c0_10 = arith.constant 0 : index
    %5 = vector.load %arg8[%c0_9, %c0_10] : memref<8x1xf32, #tpu.memory_space<vmem>>, vector<8x1xf32>
    %c0_11 = arith.constant 0 : index
    %c0_12 = arith.constant 0 : index
    %c0_13 = arith.constant 0 : index
    %6 = vector.load %arg2[%c0_11, %c0_12, %c0_13] : memref<1x4x256xf32, #tpu.memory_space<vmem>>, vector<1x4x256xf32>
    %7 = vector.shape_cast %6 : vector<1x4x256xf32> to vector<4x256xf32>
    %8 = vector.extract_strided_slice %0 {offsets = [0, 0], sizes = [12, 1], strides = [1, 1]} : vector<12x4xf32> to vector<12x1xf32>
    %9 = vector.extract_strided_slice %7 {offsets = [0, 0], sizes = [1, 256], strides = [1, 1]} : vector<4x256xf32> to vector<1x256xf32>
    %10 = vector.broadcast %8 : vector<12x1xf32> to vector<12x256xf32>
    %11 = vector.broadcast %9 : vector<1x256xf32> to vector<12x256xf32>
    %12 = arith.mulf %10, %11 : vector<12x256xf32>
    %13 = vector.extract_strided_slice %0 {offsets = [0, 1], sizes = [12, 1], strides = [1, 1]} : vector<12x4xf32> to vector<12x1xf32>
    %14 = vector.extract_strided_slice %7 {offsets = [1, 0], sizes = [1, 256], strides = [1, 1]} : vector<4x256xf32> to vector<1x256xf32>
    %15 = vector.broadcast %13 : vector<12x1xf32> to vector<12x256xf32>
    %16 = vector.broadcast %14 : vector<1x256xf32> to vector<12x256xf32>
    %17 = arith.mulf %15, %16 : vector<12x256xf32>
    %18 = arith.addf %12, %17 : vector<12x256xf32>
    %19 = vector.extract_strided_slice %0 {offsets = [0, 2], sizes = [12, 1], strides = [1, 1]} : vector<12x4xf32> to vector<12x1xf32>
    %20 = vector.extract_strided_slice %7 {offsets = [2, 0], sizes = [1, 256], strides = [1, 1]} : vector<4x256xf32> to vector<1x256xf32>
    %21 = vector.broadcast %19 : vector<12x1xf32> to vector<12x256xf32>
    %22 = vector.broadcast %20 : vector<1x256xf32> to vector<12x256xf32>
    %23 = arith.mulf %21, %22 : vector<12x256xf32>
    %24 = arith.addf %18, %23 : vector<12x256xf32>
    %25 = vector.extract_strided_slice %0 {offsets = [0, 3], sizes = [12, 1], strides = [1, 1]} : vector<12x4xf32> to vector<12x1xf32>
    %26 = vector.extract_strided_slice %7 {offsets = [3, 0], sizes = [1, 256], strides = [1, 1]} : vector<4x256xf32> to vector<1x256xf32>
    %27 = vector.broadcast %25 : vector<12x1xf32> to vector<12x256xf32>
    %28 = vector.broadcast %26 : vector<1x256xf32> to vector<12x256xf32>
    %29 = arith.mulf %27, %28 : vector<12x256xf32>
    %30 = arith.addf %24, %29 : vector<12x256xf32>
    %31 = vector.broadcast %3 : vector<12x1xf32> to vector<12x256xf32>
    %32 = arith.addf %30, %31 : vector<12x256xf32>
    %cst = arith.constant 0.000000e+00 : f32
    %33 = vector.broadcast %cst : f32 to vector<12x256xf32>
    %34 = arith.maximumf %32, %33 : vector<12x256xf32>
    %35 = vector.extract_strided_slice %1 {offsets = [0, 0], sizes = [12, 1], strides = [1, 1]} : vector<12x12xf32> to vector<12x1xf32>
    %36 = vector.extract_strided_slice %34 {offsets = [0, 0], sizes = [1, 256], strides = [1, 1]} : vector<12x256xf32> to vector<1x256xf32>
    %37 = vector.broadcast %35 : vector<12x1xf32> to vector<12x256xf32>
    %38 = vector.broadcast %36 : vector<1x256xf32> to vector<12x256xf32>
    %39 = arith.mulf %37, %38 : vector<12x256xf32>
    %40 = vector.extract_strided_slice %1 {offsets = [0, 1], sizes = [12, 1], strides = [1, 1]} : vector<12x12xf32> to vector<12x1xf32>
    %41 = vector.extract_strided_slice %34 {offsets = [1, 0], sizes = [1, 256], strides = [1, 1]} : vector<12x256xf32> to vector<1x256xf32>
    %42 = vector.broadcast %40 : vector<12x1xf32> to vector<12x256xf32>
    %43 = vector.broadcast %41 : vector<1x256xf32> to vector<12x256xf32>
    %44 = arith.mulf %42, %43 : vector<12x256xf32>
    %45 = arith.addf %39, %44 : vector<12x256xf32>
    %46 = vector.extract_strided_slice %1 {offsets = [0, 2], sizes = [12, 1], strides = [1, 1]} : vector<12x12xf32> to vector<12x1xf32>
    %47 = vector.extract_strided_slice %34 {offsets = [2, 0], sizes = [1, 256], strides = [1, 1]} : vector<12x256xf32> to vector<1x256xf32>
    %48 = vector.broadcast %46 : vector<12x1xf32> to vector<12x256xf32>
    %49 = vector.broadcast %47 : vector<1x256xf32> to vector<12x256xf32>
    %50 = arith.mulf %48, %49 : vector<12x256xf32>
    %51 = arith.addf %45, %50 : vector<12x256xf32>
    %52 = vector.extract_strided_slice %1 {offsets = [0, 3], sizes = [12, 1], strides = [1, 1]} : vector<12x12xf32> to vector<12x1xf32>
    %53 = vector.extract_strided_slice %34 {offsets = [3, 0], sizes = [1, 256], strides = [1, 1]} : vector<12x256xf32> to vector<1x256xf32>
    %54 = vector.broadcast %52 : vector<12x1xf32> to vector<12x256xf32>
    %55 = vector.broadcast %53 : vector<1x256xf32> to vector<12x256xf32>
    %56 = arith.mulf %54, %55 : vector<12x256xf32>
    %57 = arith.addf %51, %56 : vector<12x256xf32>
    %58 = vector.extract_strided_slice %1 {offsets = [0, 4], sizes = [12, 1], strides = [1, 1]} : vector<12x12xf32> to vector<12x1xf32>
    %59 = vector.extract_strided_slice %34 {offsets = [4, 0], sizes = [1, 256], strides = [1, 1]} : vector<12x256xf32> to vector<1x256xf32>
    %60 = vector.broadcast %58 : vector<12x1xf32> to vector<12x256xf32>
    %61 = vector.broadcast %59 : vector<1x256xf32> to vector<12x256xf32>
    %62 = arith.mulf %60, %61 : vector<12x256xf32>
    %63 = arith.addf %57, %62 : vector<12x256xf32>
    %64 = vector.extract_strided_slice %1 {offsets = [0, 5], sizes = [12, 1], strides = [1, 1]} : vector<12x12xf32> to vector<12x1xf32>
    %65 = vector.extract_strided_slice %34 {offsets = [5, 0], sizes = [1, 256], strides = [1, 1]} : vector<12x256xf32> to vector<1x256xf32>
    %66 = vector.broadcast %64 : vector<12x1xf32> to vector<12x256xf32>
    %67 = vector.broadcast %65 : vector<1x256xf32> to vector<12x256xf32>
    %68 = arith.mulf %66, %67 : vector<12x256xf32>
    %69 = arith.addf %63, %68 : vector<12x256xf32>
    %70 = vector.extract_strided_slice %1 {offsets = [0, 6], sizes = [12, 1], strides = [1, 1]} : vector<12x12xf32> to vector<12x1xf32>
    %71 = vector.extract_strided_slice %34 {offsets = [6, 0], sizes = [1, 256], strides = [1, 1]} : vector<12x256xf32> to vector<1x256xf32>
    %72 = vector.broadcast %70 : vector<12x1xf32> to vector<12x256xf32>
    %73 = vector.broadcast %71 : vector<1x256xf32> to vector<12x256xf32>
    %74 = arith.mulf %72, %73 : vector<12x256xf32>
    %75 = arith.addf %69, %74 : vector<12x256xf32>
    %76 = vector.extract_strided_slice %1 {offsets = [0, 7], sizes = [12, 1], strides = [1, 1]} : vector<12x12xf32> to vector<12x1xf32>
    %77 = vector.extract_strided_slice %34 {offsets = [7, 0], sizes = [1, 256], strides = [1, 1]} : vector<12x256xf32> to vector<1x256xf32>
    %78 = vector.broadcast %76 : vector<12x1xf32> to vector<12x256xf32>
    %79 = vector.broadcast %77 : vector<1x256xf32> to vector<12x256xf32>
    %80 = arith.mulf %78, %79 : vector<12x256xf32>
    %81 = arith.addf %75, %80 : vector<12x256xf32>
    %82 = vector.extract_strided_slice %1 {offsets = [0, 8], sizes = [12, 1], strides = [1, 1]} : vector<12x12xf32> to vector<12x1xf32>
    %83 = vector.extract_strided_slice %34 {offsets = [8, 0], sizes = [1, 256], strides = [1, 1]} : vector<12x256xf32> to vector<1x256xf32>
    %84 = vector.broadcast %82 : vector<12x1xf32> to vector<12x256xf32>
    %85 = vector.broadcast %83 : vector<1x256xf32> to vector<12x256xf32>
    %86 = arith.mulf %84, %85 : vector<12x256xf32>
    %87 = arith.addf %81, %86 : vector<12x256xf32>
    %88 = vector.extract_strided_slice %1 {offsets = [0, 9], sizes = [12, 1], strides = [1, 1]} : vector<12x12xf32> to vector<12x1xf32>
    %89 = vector.extract_strided_slice %34 {offsets = [9, 0], sizes = [1, 256], strides = [1, 1]} : vector<12x256xf32> to vector<1x256xf32>
    %90 = vector.broadcast %88 : vector<12x1xf32> to vector<12x256xf32>
    %91 = vector.broadcast %89 : vector<1x256xf32> to vector<12x256xf32>
    %92 = arith.mulf %90, %91 : vector<12x256xf32>
    %93 = arith.addf %87, %92 : vector<12x256xf32>
    %94 = vector.extract_strided_slice %1 {offsets = [0, 10], sizes = [12, 1], strides = [1, 1]} : vector<12x12xf32> to vector<12x1xf32>
    %95 = vector.extract_strided_slice %34 {offsets = [10, 0], sizes = [1, 256], strides = [1, 1]} : vector<12x256xf32> to vector<1x256xf32>
    %96 = vector.broadcast %94 : vector<12x1xf32> to vector<12x256xf32>
    %97 = vector.broadcast %95 : vector<1x256xf32> to vector<12x256xf32>
    %98 = arith.mulf %96, %97 : vector<12x256xf32>
    %99 = arith.addf %93, %98 : vector<12x256xf32>
    %100 = vector.extract_strided_slice %1 {offsets = [0, 11], sizes = [12, 1], strides = [1, 1]} : vector<12x12xf32> to vector<12x1xf32>
    %101 = vector.extract_strided_slice %34 {offsets = [11, 0], sizes = [1, 256], strides = [1, 1]} : vector<12x256xf32> to vector<1x256xf32>
    %102 = vector.broadcast %100 : vector<12x1xf32> to vector<12x256xf32>
    %103 = vector.broadcast %101 : vector<1x256xf32> to vector<12x256xf32>
    %104 = arith.mulf %102, %103 : vector<12x256xf32>
    %105 = arith.addf %99, %104 : vector<12x256xf32>
    %106 = vector.broadcast %4 : vector<12x1xf32> to vector<12x256xf32>
    %107 = arith.addf %105, %106 : vector<12x256xf32>
    %cst_14 = arith.constant 0.000000e+00 : f32
    %108 = vector.broadcast %cst_14 : f32 to vector<12x256xf32>
    %109 = arith.maximumf %107, %108 : vector<12x256xf32>
    %110 = vector.extract_strided_slice %2 {offsets = [0, 0], sizes = [8, 1], strides = [1, 1]} : vector<8x12xf32> to vector<8x1xf32>
    %111 = vector.extract_strided_slice %109 {offsets = [0, 0], sizes = [1, 256], strides = [1, 1]} : vector<12x256xf32> to vector<1x256xf32>
    %112 = vector.broadcast %110 : vector<8x1xf32> to vector<8x256xf32>
    %113 = vector.broadcast %111 : vector<1x256xf32> to vector<8x256xf32>
    %114 = arith.mulf %112, %113 : vector<8x256xf32>
    %115 = vector.extract_strided_slice %2 {offsets = [0, 1], sizes = [8, 1], strides = [1, 1]} : vector<8x12xf32> to vector<8x1xf32>
    %116 = vector.extract_strided_slice %109 {offsets = [1, 0], sizes = [1, 256], strides = [1, 1]} : vector<12x256xf32> to vector<1x256xf32>
    %117 = vector.broadcast %115 : vector<8x1xf32> to vector<8x256xf32>
    %118 = vector.broadcast %116 : vector<1x256xf32> to vector<8x256xf32>
    %119 = arith.mulf %117, %118 : vector<8x256xf32>
    %120 = arith.addf %114, %119 : vector<8x256xf32>
    %121 = vector.extract_strided_slice %2 {offsets = [0, 2], sizes = [8, 1], strides = [1, 1]} : vector<8x12xf32> to vector<8x1xf32>
    %122 = vector.extract_strided_slice %109 {offsets = [2, 0], sizes = [1, 256], strides = [1, 1]} : vector<12x256xf32> to vector<1x256xf32>
    %123 = vector.broadcast %121 : vector<8x1xf32> to vector<8x256xf32>
    %124 = vector.broadcast %122 : vector<1x256xf32> to vector<8x256xf32>
    %125 = arith.mulf %123, %124 : vector<8x256xf32>
    %126 = arith.addf %120, %125 : vector<8x256xf32>
    %127 = vector.extract_strided_slice %2 {offsets = [0, 3], sizes = [8, 1], strides = [1, 1]} : vector<8x12xf32> to vector<8x1xf32>
    %128 = vector.extract_strided_slice %109 {offsets = [3, 0], sizes = [1, 256], strides = [1, 1]} : vector<12x256xf32> to vector<1x256xf32>
    %129 = vector.broadcast %127 : vector<8x1xf32> to vector<8x256xf32>
    %130 = vector.broadcast %128 : vector<1x256xf32> to vector<8x256xf32>
    %131 = arith.mulf %129, %130 : vector<8x256xf32>
    %132 = arith.addf %126, %131 : vector<8x256xf32>
    %133 = vector.extract_strided_slice %2 {offsets = [0, 4], sizes = [8, 1], strides = [1, 1]} : vector<8x12xf32> to vector<8x1xf32>
    %134 = vector.extract_strided_slice %109 {offsets = [4, 0], sizes = [1, 256], strides = [1, 1]} : vector<12x256xf32> to vector<1x256xf32>
    %135 = vector.broadcast %133 : vector<8x1xf32> to vector<8x256xf32>
    %136 = vector.broadcast %134 : vector<1x256xf32> to vector<8x256xf32>
    %137 = arith.mulf %135, %136 : vector<8x256xf32>
    %138 = arith.addf %132, %137 : vector<8x256xf32>
    %139 = vector.extract_strided_slice %2 {offsets = [0, 5], sizes = [8, 1], strides = [1, 1]} : vector<8x12xf32> to vector<8x1xf32>
    %140 = vector.extract_strided_slice %109 {offsets = [5, 0], sizes = [1, 256], strides = [1, 1]} : vector<12x256xf32> to vector<1x256xf32>
    %141 = vector.broadcast %139 : vector<8x1xf32> to vector<8x256xf32>
    %142 = vector.broadcast %140 : vector<1x256xf32> to vector<8x256xf32>
    %143 = arith.mulf %141, %142 : vector<8x256xf32>
    %144 = arith.addf %138, %143 : vector<8x256xf32>
    %145 = vector.extract_strided_slice %2 {offsets = [0, 6], sizes = [8, 1], strides = [1, 1]} : vector<8x12xf32> to vector<8x1xf32>
    %146 = vector.extract_strided_slice %109 {offsets = [6, 0], sizes = [1, 256], strides = [1, 1]} : vector<12x256xf32> to vector<1x256xf32>
    %147 = vector.broadcast %145 : vector<8x1xf32> to vector<8x256xf32>
    %148 = vector.broadcast %146 : vector<1x256xf32> to vector<8x256xf32>
    %149 = arith.mulf %147, %148 : vector<8x256xf32>
    %150 = arith.addf %144, %149 : vector<8x256xf32>
    %151 = vector.extract_strided_slice %2 {offsets = [0, 7], sizes = [8, 1], strides = [1, 1]} : vector<8x12xf32> to vector<8x1xf32>
    %152 = vector.extract_strided_slice %109 {offsets = [7, 0], sizes = [1, 256], strides = [1, 1]} : vector<12x256xf32> to vector<1x256xf32>
    %153 = vector.broadcast %151 : vector<8x1xf32> to vector<8x256xf32>
    %154 = vector.broadcast %152 : vector<1x256xf32> to vector<8x256xf32>
    %155 = arith.mulf %153, %154 : vector<8x256xf32>
    %156 = arith.addf %150, %155 : vector<8x256xf32>
    %157 = vector.extract_strided_slice %2 {offsets = [0, 8], sizes = [8, 1], strides = [1, 1]} : vector<8x12xf32> to vector<8x1xf32>
    %158 = vector.extract_strided_slice %109 {offsets = [8, 0], sizes = [1, 256], strides = [1, 1]} : vector<12x256xf32> to vector<1x256xf32>
    %159 = vector.broadcast %157 : vector<8x1xf32> to vector<8x256xf32>
    %160 = vector.broadcast %158 : vector<1x256xf32> to vector<8x256xf32>
    %161 = arith.mulf %159, %160 : vector<8x256xf32>
    %162 = arith.addf %156, %161 : vector<8x256xf32>
    %163 = vector.extract_strided_slice %2 {offsets = [0, 9], sizes = [8, 1], strides = [1, 1]} : vector<8x12xf32> to vector<8x1xf32>
    %164 = vector.extract_strided_slice %109 {offsets = [9, 0], sizes = [1, 256], strides = [1, 1]} : vector<12x256xf32> to vector<1x256xf32>
    %165 = vector.broadcast %163 : vector<8x1xf32> to vector<8x256xf32>
    %166 = vector.broadcast %164 : vector<1x256xf32> to vector<8x256xf32>
    %167 = arith.mulf %165, %166 : vector<8x256xf32>
    %168 = arith.addf %162, %167 : vector<8x256xf32>
    %169 = vector.extract_strided_slice %2 {offsets = [0, 10], sizes = [8, 1], strides = [1, 1]} : vector<8x12xf32> to vector<8x1xf32>
    %170 = vector.extract_strided_slice %109 {offsets = [10, 0], sizes = [1, 256], strides = [1, 1]} : vector<12x256xf32> to vector<1x256xf32>
    %171 = vector.broadcast %169 : vector<8x1xf32> to vector<8x256xf32>
    %172 = vector.broadcast %170 : vector<1x256xf32> to vector<8x256xf32>
    %173 = arith.mulf %171, %172 : vector<8x256xf32>
    %174 = arith.addf %168, %173 : vector<8x256xf32>
    %175 = vector.extract_strided_slice %2 {offsets = [0, 11], sizes = [8, 1], strides = [1, 1]} : vector<8x12xf32> to vector<8x1xf32>
    %176 = vector.extract_strided_slice %109 {offsets = [11, 0], sizes = [1, 256], strides = [1, 1]} : vector<12x256xf32> to vector<1x256xf32>
    %177 = vector.broadcast %175 : vector<8x1xf32> to vector<8x256xf32>
    %178 = vector.broadcast %176 : vector<1x256xf32> to vector<8x256xf32>
    %179 = arith.mulf %177, %178 : vector<8x256xf32>
    %180 = arith.addf %174, %179 : vector<8x256xf32>
    %181 = vector.broadcast %5 : vector<8x1xf32> to vector<8x256xf32>
    %182 = arith.addf %180, %181 : vector<8x256xf32>
    %c0_15 = arith.constant 0 : index
    %c0_16 = arith.constant 0 : index
    %c0_17 = arith.constant 0 : index
    %183 = vector.load %arg9[%c0_15, %c0_16, %c0_17] : memref<1x8x256xf32, #tpu.memory_space<vmem>>, vector<1x8x256xf32>
    %184 = vector.shape_cast %183 : vector<1x8x256xf32> to vector<8x256xf32>
    %185 = vector.shape_cast %182 : vector<8x256xf32> to vector<1x8x256xf32>
    tpu.vector_store %arg9[%c0_15, %c0_16, %c0_17], %185 {strides = array<i32>} : memref<1x8x256xf32, #tpu.memory_space<vmem>>, vector<1x8x256xf32>,
    return
  }
  func.func @transform_0(%arg0: i32, %arg1: i32) -> (i32, i32, i32) {
    %c0_i32 = arith.constant 0 : i32
    %c0_i32_0 = arith.constant 0 : i32
    return %arg0, %c0_i32, %arg1 : i32, i32, i32
  }
  func.func @transform_1(%arg0: i32, %arg1: i32) -> (i32, i32) {
    %c0_i32 = arith.constant 0 : i32
    %c0_i32_0 = arith.constant 0 : i32
    %c0_i32_1 = arith.constant 0 : i32
    return %c0_i32, %c0_i32_0 : i32, i32
  }
  func.func @transform_2(%arg0: i32, %arg1: i32) -> (i32, i32) {
    %c0_i32 = arith.constant 0 : i32
    %c0_i32_0 = arith.constant 0 : i32
    %c0_i32_1 = arith.constant 0 : i32
    return %c0_i32, %c0_i32_0 : i32, i32
  }
  func.func @transform_3(%arg0: i32, %arg1: i32) -> (i32, i32) {
    %c0_i32 = arith.constant 0 : i32
    %c0_i32_0 = arith.constant 0 : i32
    %c0_i32_1 = arith.constant 0 : i32
    return %c0_i32, %c0_i32_0 : i32, i32
  }
  func.func @transform_4(%arg0: i32, %arg1: i32) -> (i32, i32) {
    %c0_i32 = arith.constant 0 : i32
    %c0_i32_0 = arith.constant 0 : i32
    %c0_i32_1 = arith.constant 0 : i32
    return %c0_i32, %c0_i32_0 : i32, i32
  }
  func.func @transform_5(%arg0: i32, %arg1: i32) -> (i32, i32) {
    %c0_i32 = arith.constant 0 : i32
    %c0_i32_0 = arith.constant 0 : i32
    %c0_i32_1 = arith.constant 0 : i32
    return %c0_i32, %c0_i32_0 : i32, i32
  }
  func.func @transform_6(%arg0: i32, %arg1: i32) -> (i32, i32) {
    %c0_i32 = arith.constant 0 : i32
    %c0_i32_0 = arith.constant 0 : i32
    %c0_i32_1 = arith.constant 0 : i32
    return %c0_i32, %c0_i32_0 : i32, i32
  }
  func.func @transform_7(%arg0: i32, %arg1: i32) -> (i32, i32, i32) {
    %c0_i32 = arith.constant 0 : i32
    %c0_i32_0 = arith.constant 0 : i32
    return %arg0, %c0_i32, %arg1 : i32, i32, i32
  }
}

</mosaic_0001>

<bundles_post_ra>
// kernel: tpu_custom_call.1
= control target key start
LH: loop header
LB: loop body
LE: loop exit
PB: predicated region body
PF: predicated region fallthrough
CT: control target
= control target key end

     0   :  { %12 = vsyncpa [#allocation3], 0  ;;  %s1444_s0 = inlined_call_operand.vmem [shape: f32[2,4,256], index: 0, kind: input, shape index: {}]   ;;  %s1445_s1 = inlined_call_operand.vmem [shape: f32[12,4], index: 1, kind: input, shape index: {}]   ;;  %s1446_s2 = inlined_call_operand.vmem [shape: f32[12,1], index: 2, kind: input, shape index: {}]   ;;  %s1447_s3 = inlined_call_operand.vmem [shape: f32[12,12], index: 3, kind: input, shape index: {}]   ;;  %s1448_s4 = inlined_call_operand.vmem [shape: f32[12,1], index: 4, kind: input, shape index: {}]   ;;  %s1449_s5 = inlined_call_operand.vmem [shape: f32[8,12], index: 5, kind: input, shape index: {}]   ;;  %s1450_s6 = inlined_call_operand.vmem [shape: f32[8,1], index: 6, kind: input, shape index: {}]   ;;  %s1451_s7 = inlined_call_operand.hbm [shape: f32[2,8,256], index: 7, kind: output, shape index: {}]  }
   0x1   :  { %14 = vsyncpa [#allocation3 + $0x1], 0  ;;  %s1137_s24 = smov 0   ;;  %s1139_s25 = smov 0  }
   0x2   :  { %s1141_s26 = smov 0   ;;  %s1143_s27 = smov 0  }
   0x3   :  { %s1145_s28 = smov 0   ;;  %s1147_s29 = smov 0  }
   0x4 LB: > { %s879_s30 = sadd.s32 4294967295, %s1083_s29   ;;  %s880_s8 = sadd.s32 4294967294, %s1083_s29   ;;  %s1083_s29 = sphi %s1147_s29, %s20_s29   ;;  %s1079_s28 = sphi %s1145_s28, %s1458_s28   ;;  %s1075_s27 = sphi %s1143_s27, %s1457_s27   ;;  %s1071_s26 = sphi %s1141_s26, %s1456_s26   ;;  %s1067_s25 = sphi %s1139_s25, %s1455_s25   ;;  %s1063_s24 = sphi %s1137_s24, %s1454_s24  }
   0x5   : > { %s32_s9 = sadd.s32 1, %s1079_s28  ;;  %s195_s10 = sadd.s32 1, %s1071_s26 }
   0x6   : > { %p34_p0 = scmp.ge.s32.totalorder %s32_s9, 2  ;;  %p205_p1 = scmp.ne.s32.totalorder %s1071_s26, %s1067_s25 }
   0x7   : > { %p206_p2 = scmp.eq.s32.totalorder %s879_s30, 1  ;;  %p211_p3 = scmp.ne.s32.totalorder %s1067_s25, %s1063_s24 }
   0x8   : > { %s1460_s9 = smov (%p34_p0, %s32_s9), 0  ;;  %p212_p5 = scmp.eq.s32.totalorder %s880_s8, 1 }
   0x9   : > { %p1177_p4 = por %p206_p2, %p205_p1  ;;  %s190_s12 = ssub.s32 %s1079_s28, %s1460_s9 }
   0xa   : > { %p883_p6 = scmp.ge.s32.totalorder %s1083_s29, 1  ;;  %p193_p7 = scmp.eq.s32.totalorder %s190_s12, 0 }
   0xb   : > { %p1184_p8 = por %p212_p5, %p211_p3  ;;  %p261_p9 = scmp.lt.s32.totalorder %s1083_s29, 3 }
   0xc   : > { %s1190_s14 = scalar_select %p193_p7, %s1071_s26, %s195_s10  }
   0xd   : > { %p262_p10 = pnand %p883_p6, %p261_p9 }
   0xe   : > { %p298_p11 = scmp.lt.s32.totalorder (!%p262_p10), %s1075_s27, 1  ;;  %s294_s12 = sand.u32 (!%p262_p10), 1, %s1067_s25  }
   0xf   : > { %265 = sbr.rel (%p262_p10) target bundleno = 309 (0x135), region = 48  ;;  %s884_s15 = sshll.u32 (!%p262_p10), %s294_s12, 4 }
  0x14   : > { %v308_v0 = vld [vmem:[%s1445_s1] sm:$0xff]  ;;  %v1085_v1 = vmov 2   ;;  %v1086_v2 = vmov 1   ;;  %v1087_v3 = vmov 0   ;;  %v309_v4 = vld [vmem:[%s1445_s1 + $0x8] sm:$0xf] }
  0x15   : > { %963 = vset.pattern.permute.xlu2 %v1085_v1  ;;  %962 = vset.pattern.permute.xlu1 %v1086_v2  ;;  %v1088_v5 = vmov 3   ;;  %v313_v6 = vld [vmem:[%s1446_s2] sm:$0xff]  ;;  %v314_v8 = vld [vmem:[%s1446_s2 + $0x8] sm:$0xf]  ;;  %v1089_v10 = vmov 5   ;;  %v1090_v11 = vmov 8  }
  0x16   : > { %961 = vset.pattern.permute.xlu0 %v1087_v3  ;;  %363 = vperm.xlu2 %963, %v308_v0   ;;  %v1208_v7 = vld [vmem:[%s1447_s3] sm:$0xff]  ;;  %v1219_v9 = vld [vmem:[%s1447_s3 + $0x8] sm:$0xf]  ;;  %v1091_v12 = vmov 10   ;;  %v1092_v13 = vmov 4   ;;  %v1093_v15 = vmov 6  }
  0x17   : > { %341 = vperm.xlu1 %962, %v308_v0   ;;  %321 = vperm.xlu0 %961, %v308_v0   ;;  %v1247_v14 = vld [vmem:[%s1449_s5] sm:$0xff]  ;;  %v1094_v16 = vmov 7   ;;  %v1095_v17 = vmov 9   ;;  %s299_s16 = scalar_select %p298_p11, %s1075_s27, 1  ;;  %v1096_v21 = vmov 11  }
  0x18   : > { %v316_v35 = vld [vmem:[%s1448_s4 + $0x8] sm:$0xf]  ;;  %v315_v36 = vld [vmem:[%s1448_s4] sm:$0xff] }
  0x19   : > { %s892_s17 = sshll.u32 %s299_s16, 3  ;;  %s893_s16 = sshll.u32 %s1075_s27, 4 }
  0x1a   : > { %s305_s20 = scalar_lea.vmem %s1444_s0, %s892_s17  ;;  %s798_s19 = scalar_lea.hbm %s1451_s7, %s893_s16 }
  0x1b   : > { %v318_v20 = vld [vmem:[%s305_s20] sm:$0xff]  ;;  %s296_s20 = scalar_lea.vmem [#allocation2], %s884_s15  ;;  %s802_s22 = sshll.u32 %s798_s19, 4  ;;  %s803_s22 = int_to_ptr.hbm [resolvable:$true] %s802_s22 }
  0x1c   : > { %v370_v22 = vperm.slane %v318_v20, 2  ;;  %v371_v23 = vperm.slane %v318_v20, 6  ;;  %v348_v25 = vperm.slane %v318_v20, 1  ;;  %v349_v26 = vperm.slane %v318_v20, 5  ;;  %s800_s21 = sshll.u32 %s296_s20, 4  ;;  %s785_s27 = scalar_lea.sflag [#allocation3], %s294_s12  ;;  %s801_s21 = int_to_ptr.vmem [resolvable:$true] %s800_s21 }
  0x1d   : > { %v330_v27 = vperm.slane %v318_v20, 0  ;;  %v331_v28 = vperm.slane %v318_v20, 4  ;;  %v392_v46 = vperm.slane %v318_v20, 3  ;;  %v393_v47 = vperm.slane %v318_v20, 7  ;;  %s1019_s23 = sshra.s32 %s803_s22, 4  ;;  %s1025_s15 = scalar_lea.hbm %s1451_s7, 32  ;;  %s1020_s23 = int_to_ptr.hbm [resolvable:$true] %s1019_s23 }
  0x1e   : > { %367 = vperm.xlu2 %963, %v309_v4   ;;  %v1279_v29 = vperm.slane %v370_v22, 2  ;;  %v1281_v30 = vperm.slane %v371_v23, 2  ;;  %v1283_v31 = vperm.slane %v348_v25, 1  ;;  %v1285_v32 = vperm.slane %v349_v26, 1  ;;  %s1021_s30 = scalar_lea.hbm %s1020_s23, 16  ;;  %p1026_p1 = scmp.lt.s32.totalorder %s1020_s23, %s1451_s7 }
  0x1f   : > { %345 = vperm.xlu1 %962, %v309_v4   ;;  %964 = vset.pattern.permute.xlu0 %v1088_v5  ;;  %v1287_v33 = vperm.slane %v330_v27, 0  ;;  %v1289_v34 = vperm.slane %v331_v28, 0  ;;  %v1305_v52 = vperm.slane %v392_v46, 3  ;;  %v1307_v53 = vperm.slane %v393_v47, 3  ;;  %p1022_p12 = scmp.ne.s32.totalorder %s1020_s23, %s1021_s30  ;;  %p1027_p2 = scmp.lt.s32.totalorder %s1025_s15, %s1021_s30 }
  0x20   : > { %385 = vperm.xlu0 %964, %v308_v0  }
  0x21   : > { %p1023_p13 = pnand %p1022_p12, %p1177_p4  ;;  %p1028_p3 = por %p1027_p2, %p1026_p1 }
  0x23   : > { %p1024_p0 = pneg %p1023_p13 }
  0x25   : > { %p1029_p5 = pnand %p1028_p3, %p1024_p0 }
  0x26   : > { %966 = vset.pattern.permute.xlu2 %v1087_v3 }
  0x27   : > { %965 = vset.pattern.permute.xlu1 %v1088_v5  ;;  %408 = vperm.xlu2 %966, %v313_v6  }
  0x28   : > { %389 = vperm.xlu1 %965, %v309_v4   ;;  %477 = vperm.xlu0 %964, %v1208_v7  }
  0x2f   : > { %426 = vperm.xlu2 %966, %v1208_v7  }
  0x30   : > { %967 = vset.pattern.permute.xlu1 %v1087_v3  ;;  %976 = vset.pattern.permute.xlu0 %v1089_v10 }
  0x31   : > { %413 = vperm.xlu1 %967, %v314_v8   ;;  %517 = vperm.xlu0 %976, %v1219_v9  }
  0x37   : > { %969 = vset.pattern.permute.xlu2 %v1086_v2 }
  0x38   : > { %445 = vperm.xlu2 %969, %v1219_v9  }
  0x39   : > { %968 = vset.pattern.permute.xlu1 %v1086_v2  ;;  %981 = vset.pattern.permute.xlu0 %v1090_v11 }
  0x3a   : > { %441 = vperm.xlu1 %968, %v1208_v7   ;;  %567 = vperm.xlu0 %981, %v1208_v7  }
  0x40   : > { %971 = vset.pattern.permute.xlu2 %v1085_v1 }
  0x41   : > { %463 = vperm.xlu2 %971, %v1219_v9  }
  0x42   : > { %970 = vset.pattern.permute.xlu1 %v1085_v1  ;;  %986 = vset.pattern.permute.xlu0 %v1091_v12 }
  0x43   : > { %459 = vperm.xlu1 %970, %v1208_v7   ;;  %607 = vperm.xlu0 %986, %v1219_v9  }
  0x49   : > { %973 = vset.pattern.permute.xlu2 %v1092_v13 }
  0x4a   : > { %495 = vperm.xlu2 %973, %v1208_v7  }
  0x4b   : > { %972 = vset.pattern.permute.xlu1 %v1088_v5  ;;  %987 = vset.pattern.permute.xlu0 %v1087_v3 }
  0x4c   : > { %481 = vperm.xlu1 %972, %v1219_v9   ;;  %326 = vperm.xlu0 %987, %v309_v4  }
  0x52   : > { %975 = vset.pattern.permute.xlu2 %v1089_v10 }
  0x53   : > { %513 = vperm.xlu2 %975, %v1208_v7  }
  0x54   : > { %974 = vset.pattern.permute.xlu1 %v1092_v13  ;;  %431 = vperm.xlu0 %987, %v1219_v9  }
  0x55   : > { %499 = vperm.xlu1 %974, %v1219_v9  }
  0x5b   : > { %978 = vset.pattern.permute.xlu2 %v1093_v15 }
  0x5c   : > { %535 = vperm.xlu2 %978, %v1219_v9   ;;  %658 = vperm.xlu0 %987, %v1247_v14  }
  0x5d   : > { %977 = vset.pattern.permute.xlu1 %v1093_v15 }
  0x5e   : > { %531 = vperm.xlu1 %977, %v1208_v7  }
  0x64   : > { %980 = vset.pattern.permute.xlu2 %v1094_v16  ;;  %996 = vset.pattern.permute.xlu0 %v1089_v10 }
  0x65   : > { %553 = vperm.xlu2 %980, %v1219_v9   ;;  %706 = vperm.xlu0 %996, %v1247_v14  }
  0x66   : > { %979 = vset.pattern.permute.xlu1 %v1094_v16 }
  0x67   : > { %549 = vperm.xlu1 %979, %v1208_v7  }
  0x6d   : > { %983 = vset.pattern.permute.xlu2 %v1095_v17  ;;  %1001 = vset.pattern.permute.xlu0 %v1091_v12 }
  0x6e   : > { %585 = vperm.xlu2 %983, %v1208_v7   ;;  %756 = vperm.xlu0 %1001, %v1247_v14  }
  0x6f   : > { %982 = vset.pattern.permute.xlu1 %v1090_v11 }
  0x70   : > { %571 = vperm.xlu1 %982, %v1219_v9   ;;  %v364_v18 = vpop.permute.xlu2 %363 }
  0x71   : > { %v376_v37 = vmul.f32 %v1279_v29, %v364_v18  ;;  %v377_v38 = vmul.f32 %v1281_v30, %v364_v18 }
  0x76   : > { %985 = vset.pattern.permute.xlu2 %v1091_v12  ;;  %1004 = vset.pattern.permute.xlu0 %v1087_v3 }
  0x77   : > { %603 = vperm.xlu2 %985, %v1208_v7  }
  0x78   : > { %984 = vset.pattern.permute.xlu1 %v1095_v17  ;;  %v1269_v19 = vpop.permute.xlu2 %367 }
  0x79   : > { %589 = vperm.xlu1 %984, %v1219_v9  }
  0x7f   : > { %989 = vset.pattern.permute.xlu2 %v1096_v21 }
  0x80   : > { %625 = vperm.xlu2 %989, %v1219_v9  }
  0x81   : > { %988 = vset.pattern.permute.xlu1 %v1096_v21  ;;  %v409_v24 = vpop.permute.xlu2 %408 }
  0x82   : > { %621 = vperm.xlu1 %988, %v1208_v7  }
  0x88   : > { %991 = vset.pattern.permute.xlu2 %v1087_v3 }
  0x89   : > { %v342_v39 = vpop.permute.xlu1 %341  ;;  %v322_v40 = vpop.permute.xlu0 %321  ;;  %645 = vperm.xlu2 %991, %v316_v35  }
  0x8a   : > { %v354_v41 = vmul.f32 %v1283_v31, %v342_v39  ;;  %v355_v42 = vmul.f32 %v1285_v32, %v342_v39  ;;  %v336_v43 = vmul.f32 %v1287_v33, %v322_v40  ;;  %v337_v44 = vmul.f32 %v1289_v34, %v322_v40  ;;  %990 = vset.pattern.permute.xlu1 %v1087_v3  ;;  %v427_v45 = vpop.permute.xlu2 %426 }
  0x8b   : > { %640 = vperm.xlu1 %990, %v315_v36  }
  0x8c   : > { %v358_v48 = vadd.f32 %v354_v41, %v336_v43  ;;  %v359_v49 = vadd.f32 %v355_v42, %v337_v44 }
  0x8e   : > { %v380_v50 = vadd.f32 %v376_v37, %v358_v48  ;;  %v381_v51 = vadd.f32 %v377_v38, %v359_v49 }
  0x91   : > { %v1309_v54 = vpop.permute.xlu1 %345  ;;  %993 = vset.pattern.permute.xlu2 %v1085_v1 }
  0x92   : > { %v386_v55 = vpop.permute.xlu0 %385  ;;  %676 = vperm.xlu2 %993, %v1247_v14   ;;  %v446_v56 = vpop.permute.xlu2 %445 }
  0x93   : > { %v398_v57 = vmul.f32 %v1305_v52, %v386_v55  ;;  %v399_v58 = vmul.f32 %v1307_v53, %v386_v55  ;;  %992 = vset.pattern.permute.xlu1 %v1086_v2 }
  0x94   : > { %666 = vperm.xlu1 %992, %v1247_v14  }
  0x95   : > { %v402_v59 = vadd.f32 %v398_v57, %v380_v50  ;;  %v403_v60 = vadd.f32 %v399_v58, %v381_v51 }
  0x97   : > { %v416_v61 = vadd.f32 %v409_v24, %v402_v59  ;;  %v417_v62 = vadd.f32 %v409_v24, %v403_v60  ;;  %v356_v60 = vmul.f32 %v1283_v31, %v1309_v54 }
  0x99   : > { %v1317_v63 = vmax.f32 %v416_v61, 0.0  ;;  %v1319_v0 = vmax.f32 %v417_v62, 0.0  ;;  %v357_v61 = vmul.f32 %v1285_v32, %v1309_v54 }
  0x9a   : > { %v1321_v1 = vpop.permute.xlu1 %389  ;;  %995 = vset.pattern.permute.xlu2 %v1092_v13  ;;  %v478_v4 = vpop.permute.xlu0 %477 }
  0x9b   : > { %v448_v6 = vperm.slane %v1317_v63, 1  ;;  %v449_v7 = vperm.slane %v1319_v0, 1  ;;  %696 = vperm.xlu2 %995, %v1247_v14   ;;  %v464_v2 = vpop.permute.xlu2 %463  ;;  %v466_v8 = vperm.slane %v1317_v63, 2  ;;  %v467_v9 = vperm.slane %v1319_v0, 2 }
  0x9c   : > { %994 = vset.pattern.permute.xlu1 %v1088_v5  ;;  %v434_v20 = vperm.slane %v1317_v63, 0  ;;  %v435_v22 = vperm.slane %v1319_v0, 0  ;;  %v485_v38 = vperm.slane %v1319_v0, 3  ;;  %v503_v46 = vperm.slane %v1319_v0, 4 }
  0x9d   : > { %v1330_v10 = vmul.f32 %v448_v6, %v446_v56  ;;  %v1332_v12 = vmul.f32 %v449_v7, %v446_v56  ;;  %686 = vperm.xlu1 %994, %v1247_v14   ;;  %v1335_v13 = vmul.f32 %v466_v8, %v464_v2  ;;  %v1337_v18 = vmul.f32 %v467_v9, %v464_v2 }
  0x9e   : > { %v436_v23 = vmul.f32 %v434_v20, %v427_v45  ;;  %v437_v5 = vmul.f32 %v435_v22, %v427_v45  ;;  %v487_v43 = vmul.f32 %v485_v38, %v478_v4  ;;  %v502_v45 = vperm.slane %v1317_v63, 4 }
  0x9f   : > { %v520_v49 = vperm.slane %v1317_v63, 5  ;;  %v400_v32 = vmul.f32 %v1305_v52, %v1321_v1  ;;  %v401_v54 = vmul.f32 %v1307_v53, %v1321_v1 }
  0xa3   : > { %v1345_v24 = vpop.permute.xlu1 %413  ;;  %998 = vset.pattern.permute.xlu2 %v1094_v16  ;;  %v1348_v25 = vpop.permute.xlu0 %517 }
  0xa4   : > { %726 = vperm.xlu2 %998, %v1247_v14   ;;  %v496_v28 = vpop.permute.xlu2 %495 }
  0xa5   : > { %997 = vset.pattern.permute.xlu1 %v1093_v15  ;;  %v484_v15 = vperm.slane %v1317_v63, 3  ;;  %v504_v50 = vmul.f32 %v502_v45, %v496_v28  ;;  %v505_v51 = vmul.f32 %v503_v46, %v496_v28 }
  0xa6   : > { %716 = vperm.xlu1 %997, %v1247_v14  }
  0xac   : > { %v442_v26 = vpop.permute.xlu1 %441  ;;  %1000 = vset.pattern.permute.xlu2 %v1095_v17  ;;  %v1354_v27 = vpop.permute.xlu0 %567  ;;  %v317_v17 = vld [vmem:[%s1450_s6] sm:$0xff] }
  0xad   : > { %v450_v35 = vmul.f32 %v448_v6, %v442_v26  ;;  %v451_v36 = vmul.f32 %v449_v7, %v442_v26  ;;  %746 = vperm.xlu2 %1000, %v1247_v14   ;;  %v514_v44 = vpop.permute.xlu2 %513 }
  0xae   : > { %999 = vset.pattern.permute.xlu1 %v1090_v11  ;;  %v486_v11 = vmul.f32 %v484_v15, %v478_v4  ;;  %v522_v57 = vmul.f32 %v520_v49, %v514_v44 }
  0xaf   : > { %v454_v16 = vadd.f32 %v450_v35, %v436_v23  ;;  %v455_v37 = vadd.f32 %v451_v36, %v437_v5  ;;  %736 = vperm.xlu1 %999, %v1247_v14   ;;  %v378_v23 = vmul.f32 %v1279_v29, %v1269_v19  ;;  %v379_v5 = vmul.f32 %v1281_v30, %v1269_v19 }
  0xb5   : > { %v460_v39 = vpop.permute.xlu1 %459  ;;  %v1364_v40 = vpop.permute.xlu0 %607  ;;  %1003 = vset.pattern.permute.xlu2 %v1087_v3  ;;  %v521_v3 = vperm.slane %v1319_v0, 5 }
  0xb6   : > { %v468_v41 = vmul.f32 %v466_v8, %v460_v39  ;;  %v469_v42 = vmul.f32 %v467_v9, %v460_v39  ;;  %777 = vperm.xlu2 %1003, %v317_v17   ;;  %v536_v31 = vpop.permute.xlu2 %535 }
  0xb7   : > { %1002 = vset.pattern.permute.xlu1 %v1096_v21  ;;  %v523_v58 = vmul.f32 %v521_v3, %v514_v44 }
  0xb8   : > { %v472_v47 = vadd.f32 %v468_v41, %v454_v16  ;;  %v473_v48 = vadd.f32 %v469_v42, %v455_v37  ;;  %766 = vperm.xlu1 %1002, %v1247_v14  }
  0xba   : > { %v490_v55 = vadd.f32 %v486_v11, %v472_v47  ;;  %v491_v56 = vadd.f32 %v487_v43, %v473_v48  ;;  %v538_v11 = vperm.slane %v1317_v63, 6  ;;  %v525_v43 = vmul.f32 %v521_v3, %v1348_v25 }
  0xbc   : > { %v508_v59 = vadd.f32 %v504_v50, %v490_v55  ;;  %v509_v21 = vadd.f32 %v505_v51, %v491_v56 }
  0xbe   : > { %v482_v62 = vpop.permute.xlu1 %481  ;;  %v327_v14 = vpop.permute.xlu0 %326  ;;  %v526_v4 = vadd.f32 %v522_v57, %v508_v59  ;;  %v527_v6 = vadd.f32 %v523_v58, %v509_v21 }
  0xbf   : > { %v488_v7 = vmul.f32 %v484_v15, %v482_v62  ;;  %v489_v2 = vmul.f32 %v485_v38, %v482_v62  ;;  %v338_v8 = vmul.f32 %v1287_v33, %v327_v14  ;;  %v339_v9 = vmul.f32 %v1289_v34, %v327_v14  ;;  %v554_v1 = vpop.permute.xlu2 %553 }
  0xc1   : > { %v360_v26 = vadd.f32 %v356_v60, %v338_v8  ;;  %v361_v28 = vadd.f32 %v357_v61, %v339_v9 }
  0xc3   : > { %v382_v35 = vadd.f32 %v378_v23, %v360_v26  ;;  %v383_v36 = vadd.f32 %v379_v5, %v361_v28 }
  0xc5   : > { %v404_v33 = vadd.f32 %v400_v32, %v382_v35  ;;  %v405_v16 = vadd.f32 %v401_v54, %v383_v36 }
  0xc6   : > { %v432_v34 = vpop.permute.xlu0 %431 }
  0xc7   : > { %v418_v37 = vadd.f32 %v1345_v24, %v404_v33  ;;  %v419_v29 = vadd.f32 %v1345_v24, %v405_v16  ;;  %v438_v19 = vmul.f32 %v434_v20, %v432_v34  ;;  %v439_v30 = vmul.f32 %v435_v22, %v432_v34  ;;  %v500_v15 = vpop.permute.xlu1 %499 }
  0xc8   : > { %v506_v42 = vmul.f32 %v502_v45, %v500_v15  ;;  %v507_v24 = vmul.f32 %v503_v46, %v500_v15  ;;  %v539_v20 = vperm.slane %v1319_v0, 6  ;;  %v524_v22 = vmul.f32 %v520_v49, %v1348_v25  ;;  %v586_v57 = vpop.permute.xlu2 %585 }
  0xc9   : > { %v456_v52 = vadd.f32 %v1330_v10, %v438_v19  ;;  %v457_v53 = vadd.f32 %v1332_v12, %v439_v30  ;;  %v542_v12 = vmul.f32 %v538_v11, %v536_v31  ;;  %v422_v3 = vmax.f32 %v418_v37, 0.0 }
  0xca   : > { %v543_v47 = vmul.f32 %v539_v20, %v536_v31  ;;  %v423_v21 = vmax.f32 %v419_v29, 0.0 }
  0xcb   : > { %v474_v38 = vadd.f32 %v1335_v13, %v456_v52  ;;  %v475_v17 = vadd.f32 %v1337_v18, %v457_v53  ;;  %v556_v13 = vperm.slane %v1317_v63, 7  ;;  %v557_v18 = vperm.slane %v1319_v0, 7 }
  0xcc   : > { %v574_v62 = vperm.slane %v422_v3, 0  ;;  %v575_v63 = vperm.slane %v423_v21, 0  ;;  %v592_v0 = vperm.slane %v422_v3, 1  ;;  %v610_v31 = vperm.slane %v422_v3, 2 }
  0xcd   : > { %v492_v39 = vadd.f32 %v488_v7, %v474_v38  ;;  %v493_v41 = vadd.f32 %v489_v2, %v475_v17  ;;  %v560_v55 = vmul.f32 %v556_v13, %v554_v1  ;;  %v561_v56 = vmul.f32 %v557_v18, %v554_v1 }
  0xce   : > { %v593_v7 = vperm.slane %v423_v21, 1  ;;  %v576_v5 = vmul.f32 %v574_v62, %v1354_v27  ;;  %v611_v26 = vperm.slane %v423_v21, 2  ;;  %v594_v28 = vmul.f32 %v592_v0, %v586_v57 }
  0xcf   : > { %v510_v10 = vadd.f32 %v506_v42, %v492_v39  ;;  %v511_v44 = vadd.f32 %v507_v24, %v493_v41  ;;  %v628_v39 = vperm.slane %v422_v3, 3  ;;  %v629_v41 = vperm.slane %v423_v21, 3 }
  0xd0   : > { %v532_v48 = vpop.permute.xlu1 %531  ;;  %v595_v32 = vmul.f32 %v593_v7, %v586_v57  ;;  %v614_v42 = vmul.f32 %v610_v31, %v1364_v40  ;;  %v615_v24 = vmul.f32 %v611_v26, %v1364_v40 }
  0xd1   : > { %v528_v50 = vadd.f32 %v524_v22, %v510_v10  ;;  %v529_v45 = vadd.f32 %v525_v43, %v511_v44  ;;  %v540_v46 = vmul.f32 %v538_v11, %v532_v48  ;;  %v541_v51 = vmul.f32 %v539_v20, %v532_v48 }
  0xd3   : > { %v544_v58 = vadd.f32 %v540_v46, %v526_v4  ;;  %v545_v49 = vadd.f32 %v541_v51, %v527_v6  ;;  %v546_v59 = vadd.f32 %v542_v12, %v528_v50  ;;  %v547_v25 = vadd.f32 %v543_v47, %v529_v45  ;;  %v604_v6 = vpop.permute.xlu2 %603 }
  0xd4   : > { %v577_v4 = vmul.f32 %v575_v63, %v1354_v27  ;;  %v612_v36 = vmul.f32 %v610_v31, %v604_v6  ;;  %v613_v33 = vmul.f32 %v611_v26, %v604_v6 }
  0xd5   : > { %v564_v60 = vadd.f32 %v560_v55, %v546_v59  ;;  %v565_v61 = vadd.f32 %v561_v56, %v547_v25 }
  0xd9   : > { %v550_v14 = vpop.permute.xlu1 %549 }
  0xda   : > { %v558_v2 = vmul.f32 %v556_v13, %v550_v14  ;;  %v559_v8 = vmul.f32 %v557_v18, %v550_v14 }
  0xdb   : > { %v626_v17 = vpop.permute.xlu2 %625 }
  0xdc   : > { %v562_v9 = vadd.f32 %v558_v2, %v544_v58  ;;  %v563_v23 = vadd.f32 %v559_v8, %v545_v49  ;;  %v632_v22 = vmul.f32 %v628_v39, %v626_v17  ;;  %v633_v43 = vmul.f32 %v629_v41, %v626_v17 }
  0xde   : > { %v580_v54 = vadd.f32 %v576_v5, %v562_v9  ;;  %v581_v35 = vadd.f32 %v577_v4, %v563_v23 }
  0xe0   : > { %v598_v16 = vadd.f32 %v594_v28, %v580_v54  ;;  %v599_v34 = vadd.f32 %v595_v32, %v581_v35 }
  0xe2   : > { %v572_v37 = vpop.permute.xlu1 %571  ;;  %v616_v29 = vadd.f32 %v612_v36, %v598_v16  ;;  %v617_v19 = vadd.f32 %v613_v33, %v599_v34 }
  0xe3   : > { %v578_v30 = vmul.f32 %v574_v62, %v572_v37  ;;  %v579_v15 = vmul.f32 %v575_v63, %v572_v37  ;;  %v646_v46 = vpop.permute.xlu2 %645  ;;  %v659_v62 = vpop.permute.xlu0 %658 }
  0xe5   : > { %v582_v52 = vadd.f32 %v578_v30, %v564_v60  ;;  %v583_v53 = vadd.f32 %v579_v15, %v565_v61 }
  0xeb   : > { %v590_v1 = vpop.permute.xlu1 %589 }
  0xec   : > { %v596_v27 = vmul.f32 %v592_v0, %v590_v1  ;;  %v597_v38 = vmul.f32 %v593_v7, %v590_v1  ;;  %v677_v57 = vpop.permute.xlu2 %676 }
  0xee   : > { %v600_v11 = vadd.f32 %v596_v27, %v582_v52  ;;  %v601_v20 = vadd.f32 %v597_v38, %v583_v53 }
  0xf0   : > { %v618_v10 = vadd.f32 %v614_v42, %v600_v11  ;;  %v619_v44 = vadd.f32 %v615_v24, %v601_v20 }
  0xf2   : > { %v636_v12 = vadd.f32 %v632_v22, %v618_v10  ;;  %v637_v47 = vadd.f32 %v633_v43, %v619_v44 }
  0xf4   : > { %v622_v13 = vpop.permute.xlu1 %621  ;;  %v650_v30 = vadd.f32 %v646_v46, %v636_v12  ;;  %v651_v15 = vadd.f32 %v646_v46, %v637_v47 }
  0xf5   : > { %v630_v18 = vmul.f32 %v628_v39, %v622_v13  ;;  %v631_v48 = vmul.f32 %v629_v41, %v622_v13  ;;  %v697_v2 = vpop.permute.xlu2 %696  ;;  %v707_v39 = vpop.permute.xlu0 %706 }
  0xf6   : > { %v654_v20 = vmax.f32 %v650_v30, 0.0  ;;  %v655_v22 = vmax.f32 %v651_v15, 0.0 }
  0xf7   : > { %v634_v50 = vadd.f32 %v630_v18, %v616_v29  ;;  %v635_v45 = vadd.f32 %v631_v48, %v617_v19 }
  0xf8   : > { %v759_v46 = vperm.slane %v654_v20, 2 }
  0xfd   : > { %v641_v51 = vpop.permute.xlu1 %640 }
  0xfe   : > { %v648_v55 = vadd.f32 %v641_v51, %v634_v50  ;;  %v649_v56 = vadd.f32 %v641_v51, %v635_v45  ;;  %v727_v52 = vpop.permute.xlu2 %726  ;;  %v739_v50 = vperm.slane %v654_v20, 0  ;;  %v740_v45 = vperm.slane %v655_v22, 0 }
  0xff   : > { %v760_v51 = vperm.slane %v655_v22, 2 }
 0x100   : > { %v652_v58 = vmax.f32 %v648_v55, 0.0  ;;  %v653_v40 = vmax.f32 %v649_v56, 0.0  ;;  %v749_v56 = vperm.slane %v654_v20, 1 }
 0x102   : > { %v661_v59 = vperm.slane %v652_v58, 0  ;;  %v662_v25 = vperm.slane %v653_v40, 0  ;;  %v669_v3 = vperm.slane %v652_v58, 1  ;;  %v670_v21 = vperm.slane %v653_v40, 1 }
 0x103   : > { %v679_v0 = vperm.slane %v652_v58, 2  ;;  %v680_v7 = vperm.slane %v653_v40, 2  ;;  %v689_v23 = vperm.slane %v652_v58, 3  ;;  %v690_v5 = vperm.slane %v653_v40, 3 }
 0x104   : > { %v663_v63 = vmul.f32 %v661_v59, %v659_v62  ;;  %v664_v14 = vmul.f32 %v662_v25, %v659_v62  ;;  %v699_v35 = vperm.slane %v652_v58, 4  ;;  %v700_v36 = vperm.slane %v653_v40, 4 }
 0x105   : > { %v681_v6 = vmul.f32 %v679_v0, %v677_v57  ;;  %v682_v31 = vmul.f32 %v680_v7, %v677_v57  ;;  %v709_v29 = vperm.slane %v652_v58, 5  ;;  %v710_v19 = vperm.slane %v653_v40, 5 }
 0x106   : > { %v667_v49 = vpop.permute.xlu1 %666  ;;  %v701_v34 = vmul.f32 %v699_v35, %v697_v2  ;;  %v702_v37 = vmul.f32 %v700_v36, %v697_v2  ;;  %v719_v38 = vperm.slane %v652_v58, 6  ;;  %v720_v17 = vperm.slane %v653_v40, 6 }
 0x107   : > { %v671_v60 = vmul.f32 %v669_v3, %v667_v49  ;;  %v672_v61 = vmul.f32 %v670_v21, %v667_v49  ;;  %v711_v41 = vmul.f32 %v709_v29, %v707_v39  ;;  %v712_v42 = vmul.f32 %v710_v19, %v707_v39  ;;  %v747_v55 = vpop.permute.xlu2 %746  ;;  %v757_v3 = vpop.permute.xlu0 %756 }
 0x108   : > { %v729_v43 = vperm.slane %v652_v58, 7  ;;  %v730_v10 = vperm.slane %v653_v40, 7  ;;  %v750_v57 = vperm.slane %v655_v22, 1  ;;  %v751_v21 = vmul.f32 %v749_v56, %v747_v55 }
 0x109   : > { %v673_v8 = vadd.f32 %v671_v60, %v663_v63  ;;  %v674_v9 = vadd.f32 %v672_v61, %v664_v14  ;;  %v761_v63 = vmul.f32 %v759_v46, %v757_v3  ;;  %v762_v14 = vmul.f32 %v760_v51, %v757_v3 }
 0x10a   : > { %v731_v47 = vmul.f32 %v729_v43, %v727_v52  ;;  %v732_v48 = vmul.f32 %v730_v10, %v727_v52  ;;  %v752_v60 = vmul.f32 %v750_v57, %v747_v55 }
 0x10b   : > { %v683_v32 = vadd.f32 %v681_v6, %v673_v8  ;;  %v684_v54 = vadd.f32 %v682_v31, %v674_v9  ;;  %v769_v9 = vperm.slane %v654_v20, 3 }
 0x10f   : > { %v687_v4 = vpop.permute.xlu1 %686 }
 0x110   : > { %v691_v26 = vmul.f32 %v689_v23, %v687_v4  ;;  %v692_v28 = vmul.f32 %v690_v5, %v687_v4  ;;  %v770_v23 = vperm.slane %v655_v22, 3  ;;  %v778_v31 = vpop.permute.xlu2 %777 }
 0x112   : > { %v693_v33 = vadd.f32 %v691_v26, %v683_v32  ;;  %v694_v16 = vadd.f32 %v692_v28, %v684_v54 }
 0x114   : > { %v703_v53 = vadd.f32 %v701_v34, %v693_v33  ;;  %v704_v1 = vadd.f32 %v702_v37, %v694_v16 }
 0x116   : > { %v713_v44 = vadd.f32 %v711_v41, %v703_v53  ;;  %v714_v13 = vadd.f32 %v712_v42, %v704_v1 }
 0x118   : > { %v717_v27 = vpop.permute.xlu1 %716 }
 0x119   : > { %v721_v24 = vmul.f32 %v719_v38, %v717_v27  ;;  %v722_v11 = vmul.f32 %v720_v17, %v717_v27 }
 0x11b   : > { %v723_v18 = vadd.f32 %v721_v24, %v713_v44  ;;  %v724_v12 = vadd.f32 %v722_v11, %v714_v13 }
 0x11d   : > { %v733_v59 = vadd.f32 %v731_v47, %v723_v18  ;;  %v734_v25 = vadd.f32 %v732_v48, %v724_v12 }
 0x121   : > { %v737_v49 = vpop.permute.xlu1 %736 }
 0x122   : > { %v741_v58 = vmul.f32 %v739_v50, %v737_v49  ;;  %v742_v40 = vmul.f32 %v740_v45, %v737_v49 }
 0x124   : > { %v743_v61 = vadd.f32 %v741_v58, %v733_v59  ;;  %v744_v62 = vadd.f32 %v742_v40, %v734_v25 }
 0x126   : > { %v753_v0 = vadd.f32 %v751_v21, %v743_v61  ;;  %v754_v7 = vadd.f32 %v752_v60, %v744_v62 }
 0x128   : > { %v763_v2 = vadd.f32 %v761_v63, %v753_v0  ;;  %v764_v8 = vadd.f32 %v762_v14, %v754_v7 }
 0x12a   : > { %v767_v5 = vpop.permute.xlu1 %766 }
 0x12b   : > { %v771_v4 = vmul.f32 %v769_v9, %v767_v5  ;;  %v772_v6 = vmul.f32 %v770_v23, %v767_v5 }
 0x12d   : > { %v773_v26 = vadd.f32 %v771_v4, %v763_v2  ;;  %v774_v28 = vadd.f32 %v772_v6, %v764_v8 }
 0x12f   : > { %v780_v32 = vadd.f32 %v778_v31, %v773_v26  ;;  %v781_v54 = vadd.f32 %v778_v31, %v774_v28 }
 0x131   : > { %782 = vst [vmem:[%s296_s20] sm:$0xff] %v780_v32 }
 0x132   : > { %783 = vst [vmem:[%s296_s20 + $0x8] sm:$0xff] %v781_v54 }
 0x133   : > { %1032 = shalt.err (!%p1029_p5)
}
 0x134   : > { %894 = dma.vmem_to_hbm [thread:$0]  (%p1177_p4), %s801_s21, 256, %s803_s22, %s785_s27  }
 0x135 PF: > { %p900_p6 = scmp.ge.s32.totalorder %s1083_s29, 2  ;;  %s814_s12 = sand.u32 1, %s1063_s24  }
 0x136   : > { %s815_s18 = scalar_lea.sflag [#allocation3], %s814_s12 }
 0x137   : > { %p897_p7 = pnand %p900_p6, %p1184_p8 }
 0x139   : > { %p898_p9 = pneg %p897_p7 }
 0x13b   : > { %1058 = dma.done.wait (%p898_p9), %s815_s18, 256  }
 0x13c   : > { %1060 = vsyncadd (%p898_p9), %s815_s18, 4294967040  ;;  %s20_s29 = sadd.s32 1, %s1083_s29   ;;  %s1454_s24 = smov %s1067_s25 }
 0x13d   : > { %p17_p10 = scmp.ge.s32.totalorder %s20_s29, 4   ;;  %s1455_s25 = smov %s1071_s26 }
 0x13e   : > { %s1456_s26 = smov %s1190_s14  ;;  %s1457_s27 = smov %s1079_s28 }
 0x13f   : > { %s1458_s28 = smov %s1460_s9  ;;  %19 = sbr.rel (!%p17_p10) target bundleno = 4 (0x4), region = 83 }
 0x144   :  { %821 = vsyncpa [#allocation3], 1 }
 0x145   :  { %823 = vsyncpa [#allocation3 + $0x1], 1 }

</bundles_post_ra>
